<compile_context>
chip_gen: v7x
topology: tpu7x:2x2x1
jax: 0.10.0
libtpu: 0.0.40
codegen_flags: <defaults>
</compile_context>

<pallas_src>
import jax
import jax.numpy as jnp
from jax.experimental import pallas as pl
from jax.experimental.pallas import tpu as pltpu


# ---------------------------------------------------------------------------
# Pallas kernel: (patches @ W1 + b1) @ W2 + b2 + pos, tiled over (B, row tiles)
# ---------------------------------------------------------------------------
def _fused_patch_embed_kernel(x_ref, w1_ref, b1_ref, w2_ref, b2_ref, pos_ref,
                              o_ref):
    # x tile: (1, TM, K) -> (TM, K); cast to the bf16 compute dtype of the
    # resident weights.  Both dots accumulate in f32 on the MXU.
    x = x_ref[0].astype(w1_ref.dtype)
    h = jnp.dot(x, w1_ref[...], preferred_element_type=jnp.float32)
    h = h + b1_ref[...]                        # f32 bias add
    h = h.astype(w2_ref.dtype)                 # bf16 operand for 2nd MXU pass
    o = jnp.dot(h, w2_ref[...], preferred_element_type=jnp.float32)
    o = o + b2_ref[...] + pos_ref[...]         # fused bias + (modality+global) pos
    o_ref[0] = o.astype(o_ref.dtype)


def fused_patch_embed(patches, w1, b1, w2, b2, pos, *,
                      compute_dtype=jnp.bfloat16, tm_target=512):
    """out[b, n] = (patches[b, n] @ w1 + b1) @ w2 + b2 + pos[n].

    patches: (B, N, K); w1: (K, E); b1: (E,); w2: (E, D); b2: (D,); pos: (N, D).
    """
    B, N, K = patches.shape
    E = w1.shape[1]
    D = w2.shape[1]

    # Row-tile size: large enough to hide activation DMA behind MXU work, small
    # enough that double-buffered x/out/pos tiles stay well under the scoped
    # VMEM budget on every generation (v7x: 64 MiB physical / 32 MiB scoped).
    if N <= tm_target:
        tm = N                                   # full-dim block: always legal
    else:
        tm = tm_target                           # multiple of 8
        bytes_per_row = 2 * (K * 2 + 2 * D * 4)  # 2 bufs x (x bf16 + out/pos f32)
        while tm > 8 and tm * bytes_per_row > 16 * 1024 * 1024:
            tm //= 2
    n_tiles = pl.cdiv(N, tm)

    return pl.pallas_call(
        _fused_patch_embed_kernel,
        out_shape=jax.ShapeDtypeStruct((B, N, D), patches.dtype),
        grid=(B, n_tiles),
        in_specs=[
            pl.BlockSpec((1, tm, K), lambda b, j: (b, j, 0)),   # activation tile
            pl.BlockSpec((K, E), lambda b, j: (0, 0)),          # resident weights
            pl.BlockSpec((1, E), lambda b, j: (0, 0)),
            pl.BlockSpec((E, D), lambda b, j: (0, 0)),
            pl.BlockSpec((1, D), lambda b, j: (0, 0)),
            pl.BlockSpec((tm, D), lambda b, j: (j, 0)),         # fused pos tile
        ],
        out_specs=pl.BlockSpec((1, tm, D), lambda b, j: (b, j, 0)),
        compiler_params=pltpu.CompilerParams(
            dimension_semantics=("parallel", "parallel"),
            vmem_limit_bytes=32 * 1024 * 1024,
        ),
    )(patches,
      w1.astype(compute_dtype), b1.reshape(1, -1).astype(jnp.float32),
      w2.astype(compute_dtype), b2.reshape(1, -1).astype(jnp.float32),
      pos.astype(jnp.float32))


# ---------------------------------------------------------------------------
# Parameter init (deterministic, mirrors the nn.Module shapes)
# ---------------------------------------------------------------------------
def init_params(key, modality_dims, modality_patch_sizes, modality_embed_dims,
                common_embed_dim, img_size):
    params = {"modalities": {}}
    total_seq_len = 1
    keys = jax.random.split(key, 2 + 6 * len(modality_dims))
    ki = 0
    for mod_name, input_dim in modality_dims.items():
        P = modality_patch_sizes[mod_name]
        E = modality_embed_dims[mod_name]
        if "image" in mod_name.lower() or (input_dim > 10 and P > 1):
            num_patches = (img_size // P) ** 2
            patch_dim = input_dim * P * P  # Conv2d(E, C, P, P) flattened as (C*P*P, E)
        else:
            num_patches = 1
            patch_dim = input_dim
        seq_len = 1 + num_patches
        total_seq_len += seq_len
        params["modalities"][mod_name] = {
            "w_embed": 0.02 * jax.random.normal(keys[ki], (patch_dim, E), jnp.float32),
            "b_embed": 0.01 * jax.random.normal(keys[ki + 1], (E,), jnp.float32),
            "w_proj": 0.02 * jax.random.normal(keys[ki + 2], (E, common_embed_dim), jnp.float32),
            "b_proj": 0.01 * jax.random.normal(keys[ki + 3], (common_embed_dim,), jnp.float32),
            "cls_token": jax.random.normal(keys[ki + 4], (1, 1, common_embed_dim), jnp.float32),
            "pos_embedding": jax.random.normal(keys[ki + 5], (1, seq_len, common_embed_dim), jnp.float32),
        }
        ki += 6
    params["global_cls_token"] = jax.random.normal(keys[ki], (1, 1, common_embed_dim), jnp.float32)
    params["global_pos_embedding"] = jax.random.normal(
        keys[ki + 1], (1, total_seq_len, common_embed_dim), jnp.float32)
    return params


# ---------------------------------------------------------------------------
# Forward pass (Pallas for the image patch matmuls + fused pos adds; JAX glue
# for CLS rows, tiny tabular modalities and the concat)
# ---------------------------------------------------------------------------
def patch_embedding_forward(params, x, modality_patch_sizes):
    batch = list(x.values())[0].shape[0]
    D = params["global_cls_token"].shape[-1]
    g_pos = params["global_pos_embedding"][0]           # (total_seq_len, D)

    # Global CLS row (+ its slice of the global pos embedding).
    out_list = [jnp.broadcast_to(params["global_cls_token"], (batch, 1, D))
                + g_pos[0:1][None]]
    off = 1                                              # running row offset in g_pos
    for mod_name, t in x.items():
        p = params["modalities"][mod_name]
        is_image = "image" in mod_name.lower() or (t.ndim == 4 and t.shape[2] > 10)
        if is_image:
            B, C, H, W = t.shape
            P = modality_patch_sizes[mod_name]
            nh, nw = H // P, W // P
            num_patches = nh * nw
            # Conv2d(kernel=stride=P) == extract non-overlapping patches
            # (flatten order C, P, P) and matmul with the flattened kernel.
            # TODO(synk): fold this NCHW->patch transpose into the kernel via a
            # (b, nh, nw) index_map if it shows up as a separate HBM pass.
            patches = t.reshape(B, C, nh, P, nw, P)
            patches = patches.transpose(0, 2, 4, 1, 3, 5).reshape(
                B, num_patches, C * P * P)
            # Per-modality pos (rows 1..) + global pos (rows off+1..) are
            # combined once (tiny (N, D) op) and fused into the kernel epilogue.
            pos_comb = (p["pos_embedding"][0, 1:1 + num_patches, :]
                        + g_pos[off + 1: off + 1 + num_patches, :])
            emb = fused_patch_embed(patches, p["w_embed"], p["b_embed"],
                                    p["w_proj"], p["b_proj"], pos_comb)
        else:
            # Tiny modality (M=B, K<=~10): plain JAX — Pallas launch/grid
            # overhead would dwarf the work, MXU <1% utilized.
            num_patches = 1
            h = t @ p["w_embed"] + p["b_embed"]
            e = h @ p["w_proj"] + p["b_proj"]
            pos_comb = (p["pos_embedding"][0, 1:2, :] + g_pos[off + 1: off + 2, :])
            emb = e[:, None, :] + pos_comb[None]
        cls = (jnp.broadcast_to(p["cls_token"], (batch, 1, D))
               + (p["pos_embedding"][0, 0:1, :] + g_pos[off: off + 1, :])[None])
        out_list.append(jnp.concatenate([cls, emb], axis=1))
        off += 1 + num_patches
    return jnp.concatenate(out_list, axis=1)


# ---------------------------------------------------------------------------
# Pure-JAX f32 reference (uses lax.conv for the image path) for verification
# ---------------------------------------------------------------------------
def reference_forward(params, x, modality_patch_sizes):
    batch = list(x.values())[0].shape[0]
    D = params["global_cls_token"].shape[-1]
    out_list = [jnp.broadcast_to(params["global_cls_token"], (batch, 1, D))]
    for mod_name, t in x.items():
        p = params["modalities"][mod_name]
        if "image" in mod_name.lower() or (t.ndim == 4 and t.shape[2] > 10):
            B, C, H, W = t.shape
            P = modality_patch_sizes[mod_name]
            E = p["w_embed"].shape[1]
            w_conv = p["w_embed"].T.reshape(E, C, P, P)  # OIHW
            conv = jax.lax.conv_general_dilated(
                t, w_conv, window_strides=(P, P), padding="VALID",
                dimension_numbers=("NCHW", "OIHW", "NCHW"))
            conv = conv + p["b_embed"].reshape(1, -1, 1, 1)
            emb = conv.reshape(B, E, -1).transpose(0, 2, 1)
            emb = emb @ p["w_proj"] + p["b_proj"]
        else:
            h = t @ p["w_embed"] + p["b_embed"]
            emb = (h @ p["w_proj"] + p["b_proj"])[:, None, :]
        cls = jnp.broadcast_to(p["cls_token"], (batch, 1, D))
        with_cls = jnp.concatenate([cls, emb], axis=1) + p["pos_embedding"]
        out_list.append(with_cls)
    out = jnp.concatenate(out_list, axis=1)
    return out + params["global_pos_embedding"][:, : out.shape[1], :]


if __name__ == "__main__":
    # Small synthetic config: one image modality + one tabular modality.
    # common_embed_dim chosen as a multiple of 128 so output stores are lane-dense.
    modality_dims = {"image": 4, "tabular": 8}
    modality_patch_sizes = {"image": 4, "tabular": 1}
    modality_embed_dims = {"image": 32, "tabular": 32}
    common_embed_dim = 128
    img_size = 16
    batch = 2

    key = jax.random.PRNGKey(0)
    k_params, k_img, k_tab = jax.random.split(key, 3)
    params = init_params(k_params, modality_dims, modality_patch_sizes,
                         modality_embed_dims, common_embed_dim, img_size)

    x = {
        "image": jax.random.normal(k_img, (batch, 4, img_size, img_size), jnp.float32),
        "tabular": jax.random.normal(k_tab, (batch, 8), jnp.float32),
    }

    out = jax.block_until_ready(patch_embedding_forward(params, x, modality_patch_sizes))
    ref = jax.block_until_ready(reference_forward(params, x, modality_patch_sizes))

    num_img_patches = (img_size // modality_patch_sizes["image"]) ** 2
    expected_n = 1 + (1 + num_img_patches) + (1 + 1)
    assert out.shape == (batch, expected_n, common_embed_dim), out.shape
    # bf16 matmul operands (f32 accumulation) vs a pure-f32 reference.
    assert jnp.allclose(out, ref, atol=1e-2, rtol=1e-2), float(jnp.max(jnp.abs(out - ref)))
    print("KERNEL_OK")
</pallas_src>

<mosaic_0001>
module attributes {stable_mosaic.version = 11 : i64} {
  func.func @_fused_patch_embed_kernel(%arg0: i32, %arg1: i32, %arg2: memref<1x16x64xf32, #tpu.memory_space<vmem>>, %arg3: memref<64x32xbf16, #tpu.memory_space<vmem>>, %arg4: memref<1x32xf32, #tpu.memory_space<vmem>>, %arg5: memref<32x128xbf16, #tpu.memory_space<vmem>>, %arg6: memref<1x128xf32, #tpu.memory_space<vmem>>, %arg7: memref<16x128xf32, #tpu.memory_space<vmem>>, %arg8: memref<1x16x128xf32, #tpu.memory_space<vmem>>) attributes {dimension_semantics = [#tpu.dimension_semantics<parallel>, #tpu.dimension_semantics<parallel>], iteration_bounds = array<i64: 2, 1>, scalar_prefetch = 0 : i64, scratch_operands = 0 : i64, tpu.core_type = #tpu.core_type<tc>, window_params = [{transform_indices = @transform_0, window_bounds = array<i64: 1, 16, 64>}, {pipeline_mode = #tpu.pipeline_mode<synchronous>, transform_indices = @transform_1, window_bounds = array<i64: 64, 32>}, {pipeline_mode = #tpu.pipeline_mode<synchronous>, transform_indices = @transform_2, window_bounds = array<i64: 1, 32>}, {pipeline_mode = #tpu.pipeline_mode<synchronous>, transform_indices = @transform_3, window_bounds = array<i64: 32, 128>}, {pipeline_mode = #tpu.pipeline_mode<synchronous>, transform_indices = @transform_4, window_bounds = array<i64: 1, 128>}, {transform_indices = @transform_5, window_bounds = array<i64: 16, 128>}, {transform_indices = @transform_6, window_bounds = array<i64: 1, 16, 128>}]} {
    %c0 = arith.constant 0 : index
    %c0_0 = arith.constant 0 : index
    %c0_1 = arith.constant 0 : index
    %0 = vector.load %arg2[%c0, %c0_0, %c0_1] : memref<1x16x64xf32, #tpu.memory_space<vmem>>, vector<1x16x64xf32>
    %1 = vector.shape_cast %0 : vector<1x16x64xf32> to vector<16x64xf32>
    %2 = arith.truncf %1 : vector<16x64xf32> to vector<16x64xbf16>
    %c0_2 = arith.constant 0 : index
    %c0_3 = arith.constant 0 : index
    %3 = vector.load %arg3[%c0_2, %c0_3] : memref<64x32xbf16, #tpu.memory_space<vmem>>, vector<64x32xbf16>
    %cst = arith.constant dense<0.000000e+00> : vector<16x32xf32>
    %4 = tpu.matmul %2, %3, %cst {dimension_numbers = #tpu.dot_dimension_numbers<[1], [0], [0], [1], [0, 0, 1, 1], [], []>} : vector<16x64xbf16>, vector<64x32xbf16>, vector<16x32xf32> -> vector<16x32xf32>
    %c0_4 = arith.constant 0 : index
    %c0_5 = arith.constant 0 : index
    %5 = vector.load %arg4[%c0_4, %c0_5] : memref<1x32xf32, #tpu.memory_space<vmem>>, vector<1x32xf32>
    %6 = vector.broadcast %5 : vector<1x32xf32> to vector<16x32xf32>
    %7 = arith.addf %4, %6 : vector<16x32xf32>
    %8 = arith.truncf %7 : vector<16x32xf32> to vector<16x32xbf16>
    %c0_6 = arith.constant 0 : index
    %c0_7 = arith.constant 0 : index
    %9 = vector.load %arg5[%c0_6, %c0_7] : memref<32x128xbf16, #tpu.memory_space<vmem>>, vector<32x128xbf16>
    %cst_8 = arith.constant dense<0.000000e+00> : vector<16x128xf32>
    %10 = tpu.matmul %8, %9, %cst_8 {dimension_numbers = #tpu.dot_dimension_numbers<[1], [0], [0], [1], [0, 0, 1, 1], [], []>} : vector<16x32xbf16>, vector<32x128xbf16>, vector<16x128xf32> -> vector<16x128xf32>
    %c0_9 = arith.constant 0 : index
    %c0_10 = arith.constant 0 : index
    %11 = vector.load %arg6[%c0_9, %c0_10] : memref<1x128xf32, #tpu.memory_space<vmem>>, vector<1x128xf32>
    %12 = vector.broadcast %11 : vector<1x128xf32> to vector<16x128xf32>
    %13 = arith.addf %10, %12 : vector<16x128xf32>
    %c0_11 = arith.constant 0 : index
    %c0_12 = arith.constant 0 : index
    %14 = vector.load %arg7[%c0_11, %c0_12] : memref<16x128xf32, #tpu.memory_space<vmem>>, vector<16x128xf32>
    %15 = arith.addf %13, %14 : vector<16x128xf32>
    %c0_13 = arith.constant 0 : index
    %c0_14 = arith.constant 0 : index
    %c0_15 = arith.constant 0 : index
    %16 = vector.load %arg8[%c0_13, %c0_14, %c0_15] : memref<1x16x128xf32, #tpu.memory_space<vmem>>, vector<1x16x128xf32>
    %17 = vector.shape_cast %16 : vector<1x16x128xf32> to vector<16x128xf32>
    %18 = vector.shape_cast %15 : vector<16x128xf32> to vector<1x16x128xf32>
    tpu.vector_store %arg8[%c0_13, %c0_14, %c0_15], %18 {strides = array<i32>} : memref<1x16x128xf32, #tpu.memory_space<vmem>>, vector<1x16x128xf32>,
    return
  }
  func.func @transform_0(%arg0: i32, %arg1: i32) -> (i32, i32, i32) {
    %c0_i32 = arith.constant 0 : i32
    %c0_i32_0 = arith.constant 0 : i32
    return %arg0, %arg1, %c0_i32 : i32, i32, i32
  }
  func.func @transform_1(%arg0: i32, %arg1: i32) -> (i32, i32) {
    %c0_i32 = arith.constant 0 : i32
    %c0_i32_0 = arith.constant 0 : i32
    %c0_i32_1 = arith.constant 0 : i32
    return %c0_i32, %c0_i32_0 : i32, i32
  }
  func.func @transform_2(%arg0: i32, %arg1: i32) -> (i32, i32) {
    %c0_i32 = arith.constant 0 : i32
    %c0_i32_0 = arith.constant 0 : i32
    %c0_i32_1 = arith.constant 0 : i32
    return %c0_i32, %c0_i32_0 : i32, i32
  }
  func.func @transform_3(%arg0: i32, %arg1: i32) -> (i32, i32) {
    %c0_i32 = arith.constant 0 : i32
    %c0_i32_0 = arith.constant 0 : i32
    %c0_i32_1 = arith.constant 0 : i32
    return %c0_i32, %c0_i32_0 : i32, i32
  }
  func.func @transform_4(%arg0: i32, %arg1: i32) -> (i32, i32) {
    %c0_i32 = arith.constant 0 : i32
    %c0_i32_0 = arith.constant 0 : i32
    %c0_i32_1 = arith.constant 0 : i32
    return %c0_i32, %c0_i32_0 : i32, i32
  }
  func.func @transform_5(%arg0: i32, %arg1: i32) -> (i32, i32) {
    %c0_i32 = arith.constant 0 : i32
    %c0_i32_0 = arith.constant 0 : i32
    return %arg1, %c0_i32 : i32, i32
  }
  func.func @transform_6(%arg0: i32, %arg1: i32) -> (i32, i32, i32) {
    %c0_i32 = arith.constant 0 : i32
    %c0_i32_0 = arith.constant 0 : i32
    return %arg0, %arg1, %c0_i32 : i32, i32, i32
  }
}

</mosaic_0001>

<bundles_post_ra>
// kernel: tpu_custom_call.1
= control target key start
LH: loop header
LB: loop body
LE: loop exit
PB: predicated region body
PF: predicated region fallthrough
CT: control target
= control target key end

     0   :  { %11 = vsyncpa [#allocation3], 0  ;;  %s960_s0 = inlined_call_operand.vmem [shape: f32[2,16,64], index: 0, kind: input, shape index: {}]   ;;  %s961_s1 = inlined_call_operand.vmem [shape: bf16[64,32], index: 1, kind: input, shape index: {}]   ;;  %s962_s2 = inlined_call_operand.vmem [shape: f32[1,32], index: 2, kind: input, shape index: {}]   ;;  %s963_s3 = inlined_call_operand.vmem [shape: bf16[32,128], index: 3, kind: input, shape index: {}]   ;;  %s964_s4 = inlined_call_operand.vmem [shape: f32[1,128], index: 4, kind: input, shape index: {}]   ;;  %s965_s5 = inlined_call_operand.vmem [shape: f32[16,128], index: 5, kind: input, shape index: {}]   ;;  %s966_s6 = inlined_call_operand.hbm [shape: f32[2,16,128], index: 6, kind: output, shape index: {}]  }
   0x1   :  { %13 = vsyncpa [#allocation3 + $0x1], 0  ;;  %s815_s21 = smov 0   ;;  %s817_s22 = smov 0  }
   0x2   :  { %s819_s23 = smov 0   ;;  %s821_s24 = smov 0  }
   0x3   :  { %s823_s25 = smov 0   ;;  %s825_s26 = smov 0  }
   0x4 LB: > { %s576_s27 = sadd.s32 4294967295, %s773_s26   ;;  %s577_s28 = sadd.s32 4294967294, %s773_s26   ;;  %s773_s26 = sphi %s825_s26, %s19_s26   ;;  %s769_s25 = sphi %s823_s25, %s973_s25   ;;  %s765_s24 = sphi %s821_s24, %s972_s24   ;;  %s761_s23 = sphi %s819_s23, %s971_s23   ;;  %s757_s22 = sphi %s817_s22, %s970_s22   ;;  %s753_s21 = sphi %s815_s21, %s969_s21  }
   0x5   : > { %s31_s29 = sadd.s32 1, %s769_s25  ;;  %s178_s30 = sadd.s32 1, %s761_s23 }
   0x6   : > { %p33_p0 = scmp.ge.s32.totalorder %s31_s29, 2  ;;  %p188_p1 = scmp.ne.s32.totalorder %s761_s23, %s757_s22 }
   0x7   : > { %p189_p2 = scmp.eq.s32.totalorder %s576_s27, 1  ;;  %p194_p3 = scmp.ne.s32.totalorder %s757_s22, %s753_s21 }
   0x8   : > { %s975_s29 = smov (%p33_p0, %s31_s29), 0  ;;  %p195_p5 = scmp.eq.s32.totalorder %s577_s28, 1 }
   0x9   : > { %p855_p4 = por %p189_p2, %p188_p1  ;;  %s173_s8 = ssub.s32 %s769_s25, %s975_s29 }
   0xa   : > { %p581_p6 = scmp.ge.s32.totalorder %s773_s26, 1  ;;  %p176_p7 = scmp.eq.s32.totalorder %s173_s8, 0 }
   0xb   : > { %p862_p8 = por %p195_p5, %p194_p3  ;;  %p247_p9 = scmp.lt.s32.totalorder %s773_s26, 3 }
   0xc   : > { %s868_s10 = scalar_select %p176_p7, %s761_s23, %s178_s30  }
   0xd   : > { %p248_p10 = pnand %p581_p6, %p247_p9 }
   0xe   : > { %v689_v0 = vld [vmem:[%s961_s1] sm:$0xff] (!%p248_p10)   ;;  %v775_v1 = vmov (!%p248_p10), 0.0   ;;  %v690_v2 = vld [vmem:[%s961_s1 + $0x8] sm:$0xff] (!%p248_p10)   ;;  %vm776_vm0 = vmmov (!%p248_p10), 0   ;;  %p287_p11 = scmp.lt.s32.totalorder (!%p248_p10), %s765_s24, 1  ;;  %v691_v3 = vld [vmem:[%s961_s1 + $0x10] sm:$0xff] (!%p248_p10)  }
   0xf   : > { %251 = sbr.rel (%p248_p10) target bundleno = 482 (0x1e2), region = 44  ;;  %610 = vmatprep.subr.bf16.mxu0 (!%p248_p10), %v775_v1  ;;  %622 = vmatprep.subr.bf16.mxu1 (!%p248_p10), %v775_v1  ;;  %v692_v4 = vld [vmem:[%s961_s1 + $0x18] sm:$0xff] (!%p248_p10)   ;;  %vm346_vm1 = vcmask (!%p248_p10), 523264   ;;  %v693_v8 = vld [vmem:[%s963_s3] sm:$0xff] (!%p248_p10)   ;;  %v694_v9 = vld [vmem:[%s963_s3 + $0x8] sm:$0xff] (!%p248_p10)   ;;  %vm415_vm2 = vcmask (!%p248_p10), 261120  }
  0x10   : > { %611 = vmatpush3.bf16.msra.mxu0 (!%p248_p10), %v689_v0  ;;  %618 = vmatprep.mubr.msk.bf16.mxu0 (!%p248_p10), %vm776_vm0, %v775_v1  ;;  %v585_v10 = vld [vmem:[%s962_s2] ss:$0 sm:$0xff] (!%p248_p10)  ;;  %s283_s16 = sand.u32 (!%p248_p10), 1, %s757_s22   ;;  %s601_s8 = sshll.u32 (!%p248_p10), %s765_s24, 8  ;;  %v461_v24 = vld [vmem:[%s965_s5 + $0x8] sm:$0xff] (!%p248_p10) }
  0x11   : > { %612 = vmatprep.subr.bf16.mxu0 (!%p248_p10), %v775_v1  ;;  %626 = vmatprep.mubr.msk.bf16.mxu1 (!%p248_p10), %vm776_vm0, %v775_v1  ;;  %s582_s17 = sshll.u32 (!%p248_p10), %s283_s16, 4  ;;  %v591_v18 = vld [vmem:[%s964_s4] ss:$0 sm:$0xff] (!%p248_p10) }
  0x12   : > { %623 = vmatpush3.bf16.msra.mxu1 (!%p248_p10), %v693_v8  ;;  %v460_v20 = vld [vmem:[%s965_s5] sm:$0xff] (!%p248_p10)  ;;  %s285_s28 = scalar_lea.vmem (!%p248_p10), [#allocation2], %s582_s17 }
  0x13   : > { %624 = vmatprep.subr.bf16.mxu1 (!%p248_p10), %v775_v1  ;;  %s482_s30 = sshll.u32 (!%p248_p10), %s285_s28, 4  ;;  %s907_s30 = int_to_ptr.vmem [resolvable:$true] %s482_s30 }
  0x14   : > { %613 = vmatpush3.bf16.msra.mxu0 (!%p248_p10), %v690_v2  ;;  %s695_s17 = scalar_lea.vmem (!%p248_p10), %s907_s30, 256 }
  0x15   : > { %614 = vmatprep.subr.bf16.mxu0 (!%p248_p10), %v775_v1  ;;  %p696_p12 = scmp.ne.s32.totalorder (!%p248_p10), %s907_s30, %s695_s17 }
  0x16   : > { %s288_s15 = scalar_select %p287_p11, %s765_s24, 1  ;;  %625 = vmatpush3.bf16.msra.mxu1 %v694_v9 }
  0x17   : > { %s914_s24 = scalar_lea.sflag [#allocation3], %s283_s16  ;;  %p697_p13 = pnand %p696_p12, %p855_p4 }
  0x18   : > { %s600_s18 = sshll.u32 %s288_s15, 4  ;;  %615 = vmatpush3.bf16.msra.mxu0 %v691_v3  ;;  %s912_s15 = scalar_lea.hbm %s966_s6, %s601_s8 }
  0x19   : > { %s294_s27 = scalar_lea.vmem %s960_s0, %s600_s18  ;;  %616 = vmatprep.subr.bf16.mxu0 %v775_v1  ;;  %p698_p0 = pneg %p697_p13 }
  0x1a   : > { %v304_v5 = vld [vmem:[%s294_s27] sm:$0xff]  ;;  %v305_v6 = vld [vmem:[%s294_s27 + $0x8] sm:$0xff]  ;;  %s777_s18 = smov [#allocation2]  }
  0x1b   : > { %v306_v7 = vpack.c.bf16 %v305_v6, %v304_v5  ;;  %s699_s19 = sshll.u32 %s777_s18, 4  ;;  %s700_s19 = int_to_ptr.vmem [resolvable:$false] %s699_s19 }
  0x1c   : > { %617 = vmatpush3.bf16.msra.mxu0 %v692_v4  ;;  %s701_s20 = scalar_lea.vmem %s700_s19, 512  ;;  %p702_p1 = scmp.lt.s32.totalorder %s907_s30, %s700_s19 }
  0x1d   : > { %p703_p2 = scmp.lt.s32.totalorder %s701_s20, %s695_s17 }
  0x1f   : > { %619 = vmatmul.mubr.msk.bf16.vlgmr.msra.gmra.mrb[0].mxu0 %vm346_vm1, %v306_v7  ;;  %p704_p3 = por %p703_p2, %p702_p1 }
  0x21   : > { %p705_p5 = pnand %p704_p3, %p698_p0 }
  0xf2   : > { %v384_v11 = vpop.f32.mrb[0].mxu0 }
  0xf3   : > { %v620_v12 = vpop.f32.mrb[1].mxu0  ;;  %v385_v14 = vadd.f32 %v585_v10, %v384_v11 }
  0xf4   : > { %v387_v13 = vpop.f32.mrb[2].mxu0 }
  0xf5   : > { %v388_v15 = vadd.f32 %v585_v10, %v387_v13  ;;  %v621_v16 = vpop.f32.mrb[3].mxu0 }
  0xf7   : > { %v391_v17 = vpack.c.bf16 %v388_v15, %v385_v14 }
  0xf9   : > { %627 = vmatmul.mubr.msk.bf16.vlgmr.msra.gmra.mrb[0].mxu1 %vm415_vm2, %v391_v17 }
 0x1cc   : > { %v453_v19 = vpop.f32.mrb[0].mxu1 }
 0x1cd   : > { %v454_v21 = vadd.f32 %v591_v18, %v453_v19  ;;  %v628_v22 = vpop.f32.mrb[1].mxu1 }
 0x1ce   : > { %v456_v23 = vpop.f32.mrb[2].mxu1 }
 0x1cf   : > { %v462_v25 = vadd.f32 %v460_v20, %v454_v21  ;;  %v457_v26 = vadd.f32 %v591_v18, %v456_v23  ;;  %v629_v27 = vpop.f32.mrb[3].mxu1 }
 0x1d1   : > { %464 = vst [vmem:[%s285_s28] sm:$0xff] %v462_v25  ;;  %v463_v28 = vadd.f32 %v461_v24, %v457_v26 }
 0x1d3   : > { %465 = vst [vmem:[%s285_s28 + $0x8] sm:$0xff] %v463_v28 }
 0x1d4   : > { %708 = shalt.err (!%p705_p5)
}
 0x1d5   : > { %s709_s16 = scalar_lea.hbm %s912_s15, 256  ;;  %s713_s8 = scalar_lea.hbm %s966_s6, 512 }
 0x1d6   : > { %p710_p6 = scmp.ne.s32.totalorder %s912_s15, %s709_s16  ;;  %p714_p10 = scmp.lt.u32.totalorder %s912_s15, %s966_s6 }
 0x1d7   : > { %p715_p11 = scmp.lt.u32.totalorder %s713_s8, %s709_s16  ;;  %p717_p13 = scmp.lt.u32.totalorder %s709_s16, %s912_s15 }
 0x1d8   : > { %p711_p7 = pnand %p710_p6, %p855_p4 }
 0x1d9   : > { %p716_p12 = por %p715_p11, %p714_p10 }
 0x1da   : > { %p712_p9 = pneg %p711_p7 }
 0x1db   : > { %p718_p0 = por %p717_p13, %p716_p12 }
 0x1dd   : > { %p719_p1 = pnand %p718_p0, %p712_p9 }
 0x1df   : > { %722 = shalt.err (!%p719_p1)
}
 0x1e0   : > { %s778_s13 = smov 128   ;;  %s779_s14 = smov 8  }
 0x1e1   : > { %630 = dma.vmem_to_hbm [thread:$0]  (%p855_p4), %s907_s30, 256, %s912_s15, %s914_s24, %s778_s13, %s778_s13, %s779_s14  }
 0x1e2 PF: > { %p636_p2 = scmp.ge.s32.totalorder %s773_s26, 2  ;;  %s497_s17 = sand.u32 1, %s753_s21  }
 0x1e3   : > { %s498_s18 = scalar_lea.sflag [#allocation3], %s497_s17 }
 0x1e4   : > { %p633_p3 = pnand %p636_p2, %p862_p8 }
 0x1e6   : > { %748 = dma.done.wait (!%p633_p3), %s498_s18, 256  }
 0x1e7   : > { %750 = vsyncadd (!%p633_p3), %s498_s18, 4294967040  ;;  %s19_s26 = sadd.s32 1, %s773_s26   ;;  %s969_s21 = smov %s757_s22 }
 0x1e8   : > { %p16_p5 = scmp.ge.s32.totalorder %s19_s26, 4   ;;  %s970_s22 = smov %s761_s23 }
 0x1e9   : > { %s971_s23 = smov %s868_s10  ;;  %s972_s24 = smov %s769_s25 }
 0x1ea   : > { %s973_s25 = smov %s975_s29  ;;  %18 = sbr.rel (!%p16_p5) target bundleno = 4 (0x4), region = 82 }
 0x1f1   :  { %503 = vsyncpa [#allocation3], 1 }
 0x1f2   :  { %505 = vsyncpa [#allocation3 + $0x1], 1 }

</bundles_post_ra>
